<compile_context>
chip_gen: v7x
topology: tpu7x:2x2x1
jax: 0.10.0
libtpu: 0.0.40
codegen_flags: <defaults>
</compile_context>

<pallas_src>
import functools

import jax
import jax.numpy as jnp
from jax import lax
from jax.experimental import pallas as pl
from jax.experimental.pallas import tpu as pltpu

BN_EPS = 1e-5
_LANES = 128


def _round_up(n, m=_LANES):
    return ((n + m - 1) // m) * m


def _full_spec(shape):
    # Whole-array block resident in VMEM (grid=(), single invocation).
    return pl.BlockSpec(shape, lambda *_: (0,) * len(shape))


def _make_fused_mlp_kernel(num_layers):
    """Kernel computing `num_layers` fused (ReLU -> BatchNorm1d -> Linear) blocks.

    Per layer the BN affine is folded into the Linear so that h is traversed
    once for the batch statistics and no centered/normalized activation
    temporaries are materialized.
    """

    def kernel(*refs):
        x_ref = refs[0]
        o_ref = refs[-1]
        p_refs = refs[1:-1]            # 4 per layer: gamma, beta, W, b

        n = x_ref.shape[0]             # true batch size (batch axis never padded)
        inv_n = 1.0 / n

        h = x_ref[...]
        if h.dtype != jnp.float32:     # avoid a redundant cast when already f32
            h = h.astype(jnp.float32)

        for i in range(num_layers):
            g_ref, be_ref, w_ref, b_ref = p_refs[4 * i: 4 * i + 4]
            w = w_ref[...]             # (Din, Dout); bf16 on the MXU fast path

            # ReLU
            h = jnp.maximum(h, 0.0)

            # BatchNorm1d training-mode stats in ONE traversal of h
            # (biased variance, eps = 1e-5).  All BN math stays f32.
            s1 = jnp.sum(h, axis=0, keepdims=True)          # (1, Din)
            s2 = jnp.sum(h * h, axis=0, keepdims=True)      # (1, Din)
            mean = s1 * inv_n
            var = jnp.maximum(s2 * inv_n - mean * mean, 0.0)
            scale = lax.rsqrt(var + BN_EPS) * g_ref[...]    # EUP rsqrt; (1, Din)

            # Additive BN/bias term folded into one (1,Din)@(Din,Dout) matmul.
            corr = jnp.dot((be_ref[...] - mean * scale).astype(w.dtype), w,
                           preferred_element_type=jnp.float32) + b_ref[...]

            if n > w.shape[1]:
                # Large-batch regime: fold scale into the weight rows
                # (Din*Dout multiplies < N*Din); activations stay 1x live.
                w_eff = (scale.T * w).astype(w.dtype)
                h = jnp.dot(h.astype(w.dtype), w_eff,
                            preferred_element_type=jnp.float32) + corr
            else:
                # Small-batch regime (demo): fold scale into the activations
                # (N*Din multiplies < Din*Dout); numerically better for bf16.
                h = jnp.dot((h * scale).astype(w.dtype), w,
                            preferred_element_type=jnp.float32) + corr

        o_ref[...] = h.astype(o_ref.dtype)

    return kernel


def init_mlp_params(key, layer_sizes):
    """Parameter init matching the PyTorch module's shapes/defaults.

    Linear: PyTorch stores (d_out, d_in); we store the transpose (d_in, d_out)
            so the kernel computes x @ W + b.  uniform(-1/sqrt(d_in), ...).
    BatchNorm1d: gamma = ones, beta = zeros.
    """
    params = []
    for i in range(len(layer_sizes) - 1):
        d_in, d_out = int(layer_sizes[i]), int(layer_sizes[i + 1])
        key, kw, kb = jax.random.split(key, 3)
        bound = 1.0 / jnp.sqrt(d_in)
        w = jax.random.uniform(kw, (d_in, d_out), jnp.float32, -bound, bound)
        b = jax.random.uniform(kb, (d_out,), jnp.float32, -bound, bound)
        gamma = jnp.ones((d_in,), jnp.float32)
        beta = jnp.zeros((d_in,), jnp.float32)
        params.append({"gamma": gamma, "beta": beta, "w": w, "b": b})
    return params


def pad_params(params, mxu_dtype=jnp.bfloat16, lane_multiple=_LANES):
    """Zero-pad params so every hidden/output width is lane-dense.

    * The FIRST layer keeps its true d_in, so the raw input x is fed to the
      kernel unpadded (no wrapper jnp.pad / extra HBM round trip).
    * Every d_out (hence every later d_in) is rounded up to `lane_multiple`
      so intermediate activations and the output are lane-dense.  Padded
      gamma/beta/bias lanes and padded W rows/cols are zero, so padded
      activation lanes stay exactly 0 through every layer.  The batch axis is
      never padded.
    * Weights are stored in `mxu_dtype`; bf16 is the default on ALL TPU
      generations (full-rate MXU everywhere, halves weight residency).  For
      very wide layers on v6e/v7x, lane_multiple=256 fills the 256-wide MXU.
    """
    padded = []
    for i, p in enumerate(params):
        d_in, d_out = p["w"].shape
        dip = d_in if i == 0 else _round_up(d_in, lane_multiple)
        dop = _round_up(d_out, lane_multiple)
        w = jnp.zeros((dip, dop), mxu_dtype).at[:d_in, :d_out].set(
            p["w"].astype(mxu_dtype))
        b = jnp.zeros((1, dop), jnp.float32).at[0, :d_out].set(p["b"])
        g = jnp.zeros((1, dip), jnp.float32).at[0, :d_in].set(p["gamma"])
        be = jnp.zeros((1, dip), jnp.float32).at[0, :d_in].set(p["beta"])
        padded.append((g, be, w, b))
    return padded


def _vmem_limit_bytes(resident_bytes):
    """Generation-aware scoped-VMEM limit.

    grid=() pipelines nothing, so 1x resident footprint + a margin for
    in-kernel temporaries suffices; cap below the physical VMEM of the current
    generation minus headroom for Mosaic internal scratch.
    """
    try:
        cap = int(getattr(pltpu.get_tpu_info(), "vmem_capacity_bytes", 0)) or (64 << 20)
    except Exception:  # pragma: no cover - conservative fallback (v7x per-TC)
        cap = 64 << 20
    headroom = 8 << 20
    want = max(32 << 20, int(resident_bytes) + (16 << 20))
    return int(max(16 << 20, min(cap - headroom, want)))


@functools.partial(jax.jit, static_argnames=("out_features",))
def mlp_forward_fused(x, padded_params, *, out_features):
    """Whole MLP forward in a single Pallas call; slices off feature padding."""
    n, d0 = x.shape
    assert padded_params[0][2].shape[0] == d0, (
        "first-layer W must keep the raw input width (no input padding needed)")
    d_last_p = padded_params[-1][2].shape[1]

    flat = [x]
    in_specs = [_full_spec(x.shape)]
    for layer in padded_params:
        for a in layer:
            flat.append(a)
            in_specs.append(_full_spec(a.shape))

    resident = sum(int(a.size) * a.dtype.itemsize for a in flat)
    resident += n * d_last_p * jnp.dtype(x.dtype).itemsize      # output block

    out_p = pl.pallas_call(
        _make_fused_mlp_kernel(len(padded_params)),
        out_shape=jax.ShapeDtypeStruct((n, d_last_p), x.dtype),
        grid_spec=pltpu.PrefetchScalarGridSpec(
            num_scalar_prefetch=0,
            grid=(),
            in_specs=in_specs,
            out_specs=_full_spec((n, d_last_p)),
        ),
        compiler_params=pltpu.CompilerParams(
            vmem_limit_bytes=_vmem_limit_bytes(resident)),
    )(*flat)

    return out_p[:, :out_features]


def mlp_forward_ref(x, params):
    """Pure-JAX reference with the exact PyTorch (f32, training-mode) semantics."""
    h = x.astype(jnp.float32)
    for p in params:
        h = jnp.maximum(h, 0.0)
        mean = jnp.mean(h, axis=0, keepdims=True)
        var = jnp.mean((h - mean) ** 2, axis=0, keepdims=True)
        h = (h - mean) * lax.rsqrt(var + BN_EPS) * p["gamma"] + p["beta"]
        h = jnp.dot(h, p["w"], preferred_element_type=jnp.float32) + p["b"]
    return h.astype(x.dtype)


if __name__ == "__main__":
    layer_sizes = [32, 64, 16]   # embedder MLP: 32 -> 64 -> 16
    batch = 64                   # BatchNorm1d needs a real batch; never padded

    key = jax.random.PRNGKey(0)
    kx, kp = jax.random.split(key)
    x = jax.random.normal(kx, (batch, layer_sizes[0]), jnp.float32)
    params = init_mlp_params(kp, layer_sizes)

    ref = mlp_forward_ref(x, params)

    # f32 MXU operands: tight check against exact PyTorch f32 semantics.
    out_f32 = jax.block_until_ready(mlp_forward_fused(
        x, pad_params(params, jnp.float32), out_features=layer_sizes[-1]))
    assert out_f32.shape == (batch, layer_sizes[-1])
    assert jnp.allclose(out_f32, ref, atol=5e-4, rtol=5e-4), (
        float(jnp.max(jnp.abs(out_f32 - ref))))

    # bf16 MXU operands (default fast path on all generations): f32 accum,
    # BN math in f32.  Loose sanity tolerance vs the f32 reference (ReLU+BN
    # make elementwise bf16-vs-f32 comparisons ill-conditioned).
    out_bf16 = jax.block_until_ready(mlp_forward_fused(
        x, pad_params(params, jnp.bfloat16), out_features=layer_sizes[-1]))
    assert out_bf16.shape == (batch, layer_sizes[-1])
    assert bool(jnp.all(jnp.isfinite(out_bf16)))
    assert jnp.allclose(out_bf16, ref, atol=0.2, rtol=0.1), (
        float(jnp.max(jnp.abs(out_bf16 - ref))))

    print("KERNEL_OK")
</pallas_src>

<mosaic_0001>
module attributes {stable_mosaic.version = 11 : i64} {
  func.func @kernel(%arg0: memref<64x32xf32, #tpu.memory_space<vmem>>, %arg1: memref<1x32xf32, #tpu.memory_space<vmem>>, %arg2: memref<1x32xf32, #tpu.memory_space<vmem>>, %arg3: memref<32x128xf32, #tpu.memory_space<vmem>>, %arg4: memref<1x128xf32, #tpu.memory_space<vmem>>, %arg5: memref<1x128xf32, #tpu.memory_space<vmem>>, %arg6: memref<1x128xf32, #tpu.memory_space<vmem>>, %arg7: memref<128x128xf32, #tpu.memory_space<vmem>>, %arg8: memref<1x128xf32, #tpu.memory_space<vmem>>, %arg9: memref<64x128xf32, #tpu.memory_space<vmem>>) attributes {dimension_semantics = [], scalar_prefetch = 0 : i64, scratch_operands = 0 : i64, tpu.core_type = #tpu.core_type<tc>} {
    %c0 = arith.constant 0 : index
    %c0_0 = arith.constant 0 : index
    %0 = vector.load %arg0[%c0, %c0_0] : memref<64x32xf32, #tpu.memory_space<vmem>>, vector<64x32xf32>
    %c0_1 = arith.constant 0 : index
    %c0_2 = arith.constant 0 : index
    %1 = vector.load %arg3[%c0_1, %c0_2] : memref<32x128xf32, #tpu.memory_space<vmem>>, vector<32x128xf32>
    %cst = arith.constant 0.000000e+00 : f32
    %2 = vector.broadcast %cst : f32 to vector<64x32xf32>
    %3 = arith.maximumf %0, %2 : vector<64x32xf32>
    %cst_3 = arith.constant dense<0.000000e+00> : vector<32xf32>
    %4 = vector.multi_reduction <add>, %3, %cst_3 [0] : vector<64x32xf32> to vector<32xf32>
    %5 = vector.shape_cast %4 : vector<32xf32> to vector<1x32xf32>
    %6 = arith.mulf %3, %3 : vector<64x32xf32>
    %cst_4 = arith.constant dense<0.000000e+00> : vector<32xf32>
    %7 = vector.multi_reduction <add>, %6, %cst_4 [0] : vector<64x32xf32> to vector<32xf32>
    %8 = vector.shape_cast %7 : vector<32xf32> to vector<1x32xf32>
    %cst_5 = arith.constant 1.562500e-02 : f32
    %9 = vector.broadcast %cst_5 : f32 to vector<1x32xf32>
    %10 = arith.mulf %5, %9 : vector<1x32xf32>
    %cst_6 = arith.constant 1.562500e-02 : f32
    %11 = vector.broadcast %cst_6 : f32 to vector<1x32xf32>
    %12 = arith.mulf %8, %11 : vector<1x32xf32>
    %13 = arith.mulf %10, %10 : vector<1x32xf32>
    %14 = arith.subf %12, %13 : vector<1x32xf32>
    %cst_7 = arith.constant 0.000000e+00 : f32
    %15 = vector.broadcast %cst_7 : f32 to vector<1x32xf32>
    %16 = arith.maximumf %14, %15 : vector<1x32xf32>
    %cst_8 = arith.constant 9.99999974E-6 : f32
    %17 = vector.broadcast %cst_8 : f32 to vector<1x32xf32>
    %18 = arith.addf %16, %17 : vector<1x32xf32>
    %19 = math.rsqrt %18 : vector<1x32xf32>
    %c0_9 = arith.constant 0 : index
    %c0_10 = arith.constant 0 : index
    %20 = vector.load %arg1[%c0_9, %c0_10] : memref<1x32xf32, #tpu.memory_space<vmem>>, vector<1x32xf32>
    %21 = arith.mulf %19, %20 : vector<1x32xf32>
    %c0_11 = arith.constant 0 : index
    %c0_12 = arith.constant 0 : index
    %22 = vector.load %arg2[%c0_11, %c0_12] : memref<1x32xf32, #tpu.memory_space<vmem>>, vector<1x32xf32>
    %23 = arith.mulf %10, %21 : vector<1x32xf32>
    %24 = arith.subf %22, %23 : vector<1x32xf32>
    %cst_13 = arith.constant dense<0.000000e+00> : vector<1x128xf32>
    %25 = tpu.matmul %24, %1, %cst_13 {dimension_numbers = #tpu.dot_dimension_numbers<[1], [0], [0], [1], [0, 0, 1, 1], [], []>} : vector<1x32xf32>, vector<32x128xf32>, vector<1x128xf32> -> vector<1x128xf32>
    %c0_14 = arith.constant 0 : index
    %c0_15 = arith.constant 0 : index
    %26 = vector.load %arg4[%c0_14, %c0_15] : memref<1x128xf32, #tpu.memory_space<vmem>>, vector<1x128xf32>
    %27 = arith.addf %25, %26 : vector<1x128xf32>
    %28 = vector.broadcast %21 : vector<1x32xf32> to vector<64x32xf32>
    %29 = arith.mulf %3, %28 : vector<64x32xf32>
    %cst_16 = arith.constant dense<0.000000e+00> : vector<64x128xf32>
    %30 = tpu.matmul %29, %1, %cst_16 {dimension_numbers = #tpu.dot_dimension_numbers<[1], [0], [0], [1], [0, 0, 1, 1], [], []>} : vector<64x32xf32>, vector<32x128xf32>, vector<64x128xf32> -> vector<64x128xf32>
    %31 = vector.broadcast %27 : vector<1x128xf32> to vector<64x128xf32>
    %32 = arith.addf %30, %31 : vector<64x128xf32>
    %c0_17 = arith.constant 0 : index
    %c0_18 = arith.constant 0 : index
    %33 = vector.load %arg7[%c0_17, %c0_18] : memref<128x128xf32, #tpu.memory_space<vmem>>, vector<128x128xf32>
    %cst_19 = arith.constant 0.000000e+00 : f32
    %34 = vector.broadcast %cst_19 : f32 to vector<64x128xf32>
    %35 = arith.maximumf %32, %34 : vector<64x128xf32>
    %cst_20 = arith.constant dense<0.000000e+00> : vector<128xf32>
    %36 = vector.multi_reduction <add>, %35, %cst_20 [0] : vector<64x128xf32> to vector<128xf32>
    %37 = vector.shape_cast %36 : vector<128xf32> to vector<1x128xf32>
    %38 = arith.mulf %35, %35 : vector<64x128xf32>
    %cst_21 = arith.constant dense<0.000000e+00> : vector<128xf32>
    %39 = vector.multi_reduction <add>, %38, %cst_21 [0] : vector<64x128xf32> to vector<128xf32>
    %40 = vector.shape_cast %39 : vector<128xf32> to vector<1x128xf32>
    %cst_22 = arith.constant 1.562500e-02 : f32
    %41 = vector.broadcast %cst_22 : f32 to vector<1x128xf32>
    %42 = arith.mulf %37, %41 : vector<1x128xf32>
    %cst_23 = arith.constant 1.562500e-02 : f32
    %43 = vector.broadcast %cst_23 : f32 to vector<1x128xf32>
    %44 = arith.mulf %40, %43 : vector<1x128xf32>
    %45 = arith.mulf %42, %42 : vector<1x128xf32>
    %46 = arith.subf %44, %45 : vector<1x128xf32>
    %cst_24 = arith.constant 0.000000e+00 : f32
    %47 = vector.broadcast %cst_24 : f32 to vector<1x128xf32>
    %48 = arith.maximumf %46, %47 : vector<1x128xf32>
    %cst_25 = arith.constant 9.99999974E-6 : f32
    %49 = vector.broadcast %cst_25 : f32 to vector<1x128xf32>
    %50 = arith.addf %48, %49 : vector<1x128xf32>
    %51 = math.rsqrt %50 : vector<1x128xf32>
    %c0_26 = arith.constant 0 : index
    %c0_27 = arith.constant 0 : index
    %52 = vector.load %arg5[%c0_26, %c0_27] : memref<1x128xf32, #tpu.memory_space<vmem>>, vector<1x128xf32>
    %53 = arith.mulf %51, %52 : vector<1x128xf32>
    %c0_28 = arith.constant 0 : index
    %c0_29 = arith.constant 0 : index
    %54 = vector.load %arg6[%c0_28, %c0_29] : memref<1x128xf32, #tpu.memory_space<vmem>>, vector<1x128xf32>
    %55 = arith.mulf %42, %53 : vector<1x128xf32>
    %56 = arith.subf %54, %55 : vector<1x128xf32>
    %cst_30 = arith.constant dense<0.000000e+00> : vector<1x128xf32>
    %57 = tpu.matmul %56, %33, %cst_30 {dimension_numbers = #tpu.dot_dimension_numbers<[1], [0], [0], [1], [0, 0, 1, 1], [], []>} : vector<1x128xf32>, vector<128x128xf32>, vector<1x128xf32> -> vector<1x128xf32>
    %c0_31 = arith.constant 0 : index
    %c0_32 = arith.constant 0 : index
    %58 = vector.load %arg8[%c0_31, %c0_32] : memref<1x128xf32, #tpu.memory_space<vmem>>, vector<1x128xf32>
    %59 = arith.addf %57, %58 : vector<1x128xf32>
    %60 = vector.broadcast %53 : vector<1x128xf32> to vector<64x128xf32>
    %61 = arith.mulf %35, %60 : vector<64x128xf32>
    %cst_33 = arith.constant dense<0.000000e+00> : vector<64x128xf32>
    %62 = tpu.matmul %61, %33, %cst_33 {dimension_numbers = #tpu.dot_dimension_numbers<[1], [0], [0], [1], [0, 0, 1, 1], [], []>} : vector<64x128xf32>, vector<128x128xf32>, vector<64x128xf32> -> vector<64x128xf32>
    %63 = vector.broadcast %59 : vector<1x128xf32> to vector<64x128xf32>
    %64 = arith.addf %62, %63 : vector<64x128xf32>
    %c0_34 = arith.constant 0 : index
    %c0_35 = arith.constant 0 : index
    %65 = vector.load %arg9[%c0_34, %c0_35] : memref<64x128xf32, #tpu.memory_space<vmem>>, vector<64x128xf32>
    tpu.vector_store %arg9[%c0_34, %c0_35], %64 {strides = array<i32>} : memref<64x128xf32, #tpu.memory_space<vmem>>, vector<64x128xf32>,
    return
  }
}

</mosaic_0001>

<bundles_post_ra>
// kernel: mlp_forward_fused.1
= control target key start
LH: loop header
LB: loop body
LE: loop exit
PB: predicated region body
PF: predicated region fallthrough
CT: control target
= control target key end

     0   :  { %14 = vsyncpa [#allocation3], 0  ;;  %s904_s30 = smov [#allocation2]   ;;  %s1165_s0 = inlined_call_operand.vmem [shape: f32[64,32], index: 0, kind: input, shape index: {}]   ;;  %s1166_s1 = inlined_call_operand.vmem [shape: f32[1,32], index: 1, kind: input, shape index: {}]   ;;  %s1167_s2 = inlined_call_operand.vmem [shape: f32[1,32], index: 2, kind: input, shape index: {}]   ;;  %s1168_s3 = inlined_call_operand.vmem [shape: f32[32,128], index: 3, kind: input, shape index: {}]   ;;  %s1169_s4 = inlined_call_operand.vmem [shape: f32[1,128], index: 4, kind: input, shape index: {}]   ;;  %s1170_s5 = inlined_call_operand.vmem [shape: f32[1,128], index: 5, kind: input, shape index: {}]   ;;  %s1171_s6 = inlined_call_operand.vmem [shape: f32[1,128], index: 6, kind: input, shape index: {}]   ;;  %s1172_s7 = inlined_call_operand.hbm [shape: f32[128,128], index: 7, kind: input, shape index: {}]   ;;  %s1173_s8 = inlined_call_operand.vmem [shape: f32[1,128], index: 8, kind: input, shape index: {}]   ;;  %s1174_s9 = inlined_call_operand.vmem [shape: f32[64,128], index: 9, kind: output, shape index: {}]  }
   0x1   :  { %s34_s10 = sshll.u32 %s904_s30, 4  ;;  %s880_s13 = scalar_lea.hbm %s1172_s7, 2048  ;;  %s35_s10 = int_to_ptr.vmem [resolvable:$true] %s34_s10 }
   0x2   :  { %p881_p0 = scmp.ne.s32.totalorder %s1172_s7, %s880_s13  ;;  %p884_p1 = scmp.lt.u32.totalorder %s880_s13, %s1172_s7 }
   0x4   :  { %p886_p2 = pnand %p884_p1, %p881_p0 }
   0x6   :  { %889 = shalt.err (!%p886_p2)
}
   0x7   :  { %s890_s18 = scalar_lea.vmem %s35_s10, 2048  ;;  %p895_p4 = scmp.lt.s32.totalorder %s35_s10, %s35_s10 }
   0x8   :  { %p891_p3 = scmp.ne.s32.totalorder %s35_s10, %s890_s18  ;;  %p896_p5 = scmp.lt.s32.totalorder %s890_s18, %s890_s18 }
   0xa   :  { %p897_p6 = por %p896_p5, %p895_p4 }
   0xc   :  { %p898_p7 = pnand %p897_p6, %p891_p3 }
   0xe   :  { %901 = shalt.err (!%p898_p7)
}
   0xf   :  { %s905_s19 = smov 128   ;;  %s906_s20 = smov 8  }
  0x10   :  { %40 = dma.hbm_to_vmem [thread:$0]  %s1172_s7, 2048, %s35_s10, [#allocation3], %s905_s19, %s905_s19, %s906_s20  }
  0x11   :  { %902 = dma.done.wait [#allocation3], 2048  }
  0x12   :  { %903 = vsyncadd [#allocation3], 4294965248  ;;  %v907_v0 = vmov 0.0|0.0   ;;  %vm908_vm0 = vmmov 0   ;;  %v909_v1 = vmov 0.0   ;;  %v54_v2 = vld [vmem:[%s1168_s3] sm:$0xff] }
  0x13   :  { %800 = vmatprep.subr.bf16.mxu0 %v907_v0  ;;  %698 = vmatprep.mubr.msk.f32.mxu0 %vm908_vm0, %v909_v1  ;;  %v55_v3 = vld [vmem:[%s1168_s3 + $0x8] sm:$0xff]  ;;  %v56_v4 = vld [vmem:[%s1168_s3 + $0x10] sm:$0xff]  ;;  %v57_v6 = vld [vmem:[%s1168_s3 + $0x18] sm:$0xff]  ;;  %vm66_vm1 = vcmask 261120  }
  0x14   :  { %v984_v5 = vpack.c.bf16 %v55_v3, %v54_v2  ;;  %v46_v7 = vld [vmem:[%s1165_s0] sm:$0xff]  ;;  %v47_v8 = vld [vmem:[%s1165_s0 + $0x8] sm:$0xff]  ;;  %v48_v9 = vld [vmem:[%s1165_s0 + $0x10] sm:$0xff]  ;;  %v1009_v14 = vpack.c.bf16 %v57_v6, %v56_v4 }
  0x15   :  { %v49_v10 = vld [vmem:[%s1165_s0 + $0x18] sm:$0xff]  ;;  %v50_v11 = vld [vmem:[%s1165_s0 + $0x20] sm:$0xff]  ;;  %v1004_v12 = vmax.f32 %v46_v7, 0.0  ;;  %v1006_v13 = vmax.f32 %v47_v8, 0.0  ;;  %v51_v15 = vld [vmem:[%s1165_s0 + $0x28] sm:$0xff]  ;;  %v1014_v16 = vmax.f32 %v48_v9, 0.0 }
  0x16   :  { %802 = vmatpush3.bf16.msra.mxu0 %v984_v5  ;;  %v1016_v17 = vmax.f32 %v49_v10, 0.0  ;;  %v1019_v18 = vmax.f32 %v50_v11, 0.0  ;;  %v52_v20 = vld [vmem:[%s1165_s0 + $0x30] sm:$0xff]  ;;  %v1030_v23 = vmax.f32 %v51_v15, 0.0  ;;  %v53_v30 = vld [vmem:[%s1165_s0 + $0x38] sm:$0xff] }
  0x17   :  { %803 = vmatprep.subr.bf16.mxu0 %v907_v0  ;;  %v67_v19 = vsel %vm66_vm1, %v1004_v12, 0.0  ;;  %v68_v21 = vsel %vm66_vm1, %v1006_v13, 0.0  ;;  %v70_v22 = vsel %vm66_vm1, %v1014_v16, 0.0  ;;  %v88_v26 = vmul.f32 %v1004_v12, %v1004_v12 }
  0x18   :  { %v69_v24 = vadd.f32 %v68_v21, %v67_v19  ;;  %v72_v25 = vsel %vm66_vm1, %v1016_v17, 0.0  ;;  %v89_v27 = vmul.f32 %v1006_v13, %v1006_v13  ;;  %v90_v28 = vmul.f32 %v1014_v16, %v1014_v16 }
  0x19   :  { %v91_v29 = vmul.f32 %v1016_v17, %v1016_v17  ;;  %v1047_v31 = vmax.f32 %v52_v20, 0.0  ;;  %v74_v33 = vsel %vm66_vm1, %v1019_v18, 0.0  ;;  %v92_v34 = vmul.f32 %v1019_v18, %v1019_v18 }
  0x1a   :  { %805 = vmatpush3.bf16.msra.mxu0 %v1009_v14  ;;  %v71_v32 = vadd.f32 %v70_v22, %v69_v24  ;;  %v96_v35 = vsel %vm66_vm1, %v88_v26, 0.0  ;;  %v97_v36 = vsel %vm66_vm1, %v89_v27, 0.0  ;;  %v99_v37 = vsel %vm66_vm1, %v90_v28, 0.0  ;;  %v124_v28 = vld [vmem:[%s1166_s1] sm:$0x1] }
  0x1b   :  { %807 = vmatprep.subr.bf16.mxu0 %v984_v5  ;;  %v98_v39 = vadd.f32 %v97_v36, %v96_v35  ;;  %v1056_v40 = vmax.f32 %v53_v30, 0.0  ;;  %v76_v41 = vsel %vm66_vm1, %v1030_v23, 0.0  ;;  %v93_v42 = vmul.f32 %v1030_v23, %v1030_v23 }
  0x1c   :  { %v73_v38 = vadd.f32 %v72_v25, %v71_v32  ;;  %v101_v43 = vsel %vm66_vm1, %v91_v29, 0.0  ;;  %v78_v46 = vsel %vm66_vm1, %v1047_v31, 0.0  ;;  %v94_v47 = vmul.f32 %v1047_v31, %v1047_v31 }
  0x1d   :  { %v100_v45 = vadd.f32 %v99_v37, %v98_v39  ;;  %v103_v48 = vsel %vm66_vm1, %v92_v34, 0.0  ;;  %v80_v51 = vsel %vm66_vm1, %v1056_v40, 0.0  ;;  %v95_v52 = vmul.f32 %v1056_v40, %v1056_v40 }
  0x1e   :  { %v75_v44 = vadd.f32 %v74_v33, %v73_v38  ;;  %v105_v53 = vsel %vm66_vm1, %v93_v42, 0.0  ;;  %v107_v56 = vsel %vm66_vm1, %v94_v47, 0.0  ;;  %v203_v26 = vlaneseq  ;;  %v126_v33 = vld [vmem:[%s1167_s2] sm:$0x1] }
  0x1f   :  { %v102_v50 = vadd.f32 %v101_v43, %v100_v45  ;;  %v109_v59 = vsel %vm66_vm1, %v95_v52, 0.0  ;;  %v353_v43 = vld [vmem:[#allocation2 + $0x28] sm:$0xff]  ;;  %v355_v45 = vld [vmem:[#allocation2 + $0x38] sm:$0xff]  ;;  %v356_v47 = vld [vmem:[#allocation2 + $0x40] sm:$0xff] }
  0x20   :  { %v77_v49 = vadd.f32 %v76_v41, %v75_v44  ;;  %v204_v27 = vshrl.u32 %v203_v26, 7 }
  0x21   :  { %v104_v55 = vadd.f32 %v103_v48, %v102_v50  ;;  %v357_v48 = vld [vmem:[#allocation2 + $0x48] sm:$0xff]  ;;  %v358_v50 = vld [vmem:[#allocation2 + $0x50] sm:$0xff] }
  0x22   :  { %v79_v54 = vadd.f32 %v78_v46, %v77_v49  ;;  %v1078_v29 = vsub.s32 0, %v204_v27  ;;  %v827_v49 = vpack.c.bf16 %v357_v48, %v356_v47 }
  0x23   :  { %v106_v58 = vadd.f32 %v105_v53, %v104_v55  ;;  %v360_v53 = vld [vmem:[#allocation2 + $0x60] sm:$0xff] }
  0x24   :  { %v81_v57 = vadd.f32 %v80_v51, %v79_v54  ;;  %v359_v51 = vld [vmem:[#allocation2 + $0x58] sm:$0xff]  ;;  %v361_v54 = vld [vmem:[#allocation2 + $0x68] sm:$0xff] }
  0x25   :  { %v108_v61 = vadd.f32 %v107_v56, %v106_v58  ;;  %v830_v52 = vpack.c.bf16 %v359_v51, %v358_v50  ;;  %v833_v55 = vpack.c.bf16 %v361_v54, %v360_v53  ;;  %v362_v56 = vld [vmem:[#allocation2 + $0x70] sm:$0xff] }
  0x26   :  { %v82_v60 = vrot.slane %v81_v57, 4 }
  0x27   :  { %v110_v63 = vadd.f32 %v109_v59, %v108_v61  ;;  %v129_v59 = vld [vmem:[%s1169_s4] sm:$0x1] }
  0x28   :  { %v83_v62 = vadd.f32 %v82_v60, %v81_v57  ;;  %v363_v57 = vld [vmem:[#allocation2 + $0x78] sm:$0xff] }
  0x29   :  { %v111_v3 = vrot.slane %v110_v63, 4  ;;  %v836_v58 = vpack.c.bf16 %v363_v57, %v362_v56 }
  0x2a   :  { %v84_v2 = vrot.slane %v83_v62, 2 }
  0x2b   :  { %v112_v6 = vadd.f32 %v111_v3, %v110_v63 }
  0x2c   :  { %v85_v4 = vadd.f32 %v84_v2, %v83_v62 }
  0x2d   :  { %v113_v8 = vrot.slane %v112_v6, 2 }
  0x2e   :  { %v86_v7 = vrot.slane %v85_v4, 1 }
  0x2f   :  { %v114_v10 = vadd.f32 %v113_v8, %v112_v6 }
  0x30   :  { %v87_v9 = vadd.f32 %v86_v7, %v85_v4 }
  0x31   :  { %v115_v11 = vrot.slane %v114_v10, 1 }
  0x32   :  { %v117_v15 = vmul.f32 0.015625, %v87_v9 }
  0x33   :  { %v116_v19 = vadd.f32 %v115_v11, %v114_v10 }
  0x34   :  { %v119_v20 = vmul.f32 %v117_v15, %v117_v15 }
  0x35   :  { %v118_v21 = vmul.f32 0.015625, %v116_v19 }
  0x37   :  { %v120_v22 = vsub.f32 %v118_v21, %v119_v20 }
  0x39   :  { %v121_v24 = vmax.f32 %v120_v22, 0.0 }
  0x3b   :  { %v122_v25 = vadd.f32 1e-05, %v121_v24 }
  0x3d   :  { %876 = vrsqrt.f32 %v122_v25 }
  0x47   :  { %v877_v30 = vpop.eup %876 }
  0x48   :  { %v125_v32 = vmul.f32 %v877_v30, %v124_v28 }
  0x4a   :  { %v127_v34 = vmul.f32 %v125_v32, %v117_v15  ;;  %v206_v35 = vrot.slane %v125_v32, %v1078_v29 }
  0x4c   :  { %v128_v36 = vsub.f32 %v126_v33, %v127_v34  ;;  %v207_v37 = vmul.f32 %v206_v35, %v1004_v12  ;;  %v208_v38 = vmul.f32 %v206_v35, %v1006_v13  ;;  %v209_v39 = vmul.f32 %v206_v35, %v1014_v16  ;;  %v348_v16 = vld [vmem:[#allocation2] sm:$0xff] }
  0x4d   :  { %v210_v12 = vmul.f32 %v206_v35, %v1016_v17  ;;  %v212_v41 = vmul.f32 %v206_v35, %v1030_v23  ;;  %v213_v13 = vmul.f32 %v206_v35, %v1047_v31  ;;  %v349_v17 = vld [vmem:[#allocation2 + $0x8] sm:$0xff]  ;;  %v350_v23 = vld [vmem:[#allocation2 + $0x10] sm:$0xff]  ;;  %v351_v31 = vld [vmem:[#allocation2 + $0x18] sm:$0xff] }
  0x4e   :  { %699 = vmatmul.mubr.msk.f32.vlgmr.msra.gmra.mrb[0].mxu0 %vm66_vm1, %v128_v36  ;;  %v818_v42 = vpack.c.bf16 %v351_v31, %v350_v23 }
  0x4f   :  { %809 = vmatpush3.bf16.msra.mxu0 %v984_v5  ;;  %709 = vmatprep.mubr.msk.f32.mxu0 %vm66_vm1, %v207_v37  ;;  %v211_v5 = vmul.f32 %v206_v35, %v1019_v18  ;;  %v815_v18 = vpack.c.bf16 %v349_v17, %v348_v16 }
  0x50   :  { %811 = vmatprep.subr.bf16.mxu0 %v1009_v14 }
  0x51   :  { %839 = vmatprep.subr.bf16.mxu1 %v815_v18 }
  0x52   :  { %841 = vmatpush3.bf16.msra.mxu1 %v815_v18 }
  0x53   :  { %813 = vmatpush3.bf16.msra.mxu0 %v1009_v14  ;;  %v214_v14 = vmul.f32 %v206_v35, %v1056_v40  ;;  %843 = vmatprep.subr.bf16.mxu1 %v818_v42  ;;  %v352_v40 = vld [vmem:[#allocation2 + $0x20] sm:$0xff] }
  0x54   :  { %814 = vmatprep.subr.bf16.mxu0 %v907_v0  ;;  %v821_v44 = vpack.c.bf16 %v353_v43, %v352_v40 }
  0x56   :  { %710 = vmatmul.mubr.msk.f32.vlgmr.msra.gmra.mrb[2].mxu0 %vm66_vm1, %v208_v38  ;;  %845 = vmatpush3.bf16.msra.mxu1 %v818_v42 }
  0x57   :  { %712 = vmatprep.mubr.msk.f32.mxu0 %vm66_vm1, %v209_v39  ;;  %816 = vmatpush3.bf16.msra.mxu0 %v815_v18 }
  0x58   :  { %817 = vmatprep.subr.bf16.mxu0 %v907_v0  ;;  %847 = vmatprep.subr.bf16.mxu1 %v821_v44 }
  0x5a   :  { %713 = vmatmul.mubr.msk.f32.gmra.mrb[4].mxu0 %vm66_vm1, %v210_v12  ;;  %849 = vmatpush3.bf16.msra.mxu1 %v821_v44 }
  0x5b   :  { %715 = vmatprep.mubr.msk.f32.mxu0 %vm66_vm1, %v211_v5  ;;  %819 = vmatpush3.bf16.msra.mxu0 %v818_v42 }
  0x5c   :  { %820 = vmatprep.subr.bf16.mxu0 %v907_v0 }
  0x5e   :  { %716 = vmatmul.mubr.msk.f32.gmra.mrb[6].mxu0 %vm66_vm1, %v212_v41 }
  0x5f   :  { %718 = vmatprep.mubr.msk.f32.mxu0 %vm66_vm1, %v213_v13  ;;  %822 = vmatpush3.bf16.msra.mxu0 %v821_v44 }
  0x60   :  { %823 = vmatprep.subr.bf16.mxu0 %v907_v0 }
  0x62   :  { %719 = vmatmul.mubr.msk.f32.gmra.mrb[8].mxu0 %vm66_vm1, %v214_v14 }
  0x63   :  { %753 = vmatprep.mubr.msk.f32.mxu0 %vm908_vm0, %v909_v1  ;;  %v354_v1 = vld [vmem:[#allocation2 + $0x30] sm:$0xff] }
  0x64   :  { %v824_v46 = vpack.c.bf16 %v355_v45, %v354_v1 }
  0x66   :  { %825 = vmatpush3.bf16.msra.mxu0 %v824_v46  ;;  %851 = vmatprep.subr.bf16.mxu1 %v824_v46 }
  0x67   :  { %853 = vmatpush3.bf16.msra.mxu1 %v824_v46  ;;  %826 = vmatprep.subr.bf16.mxu0 %v907_v0 }
  0x68   :  { %855 = vmatprep.subr.bf16.mxu1 %v827_v49 }
  0x6a   :  { %828 = vmatpush3.bf16.msra.mxu0 %v827_v49 }
  0x6b   :  { %857 = vmatpush3.bf16.msra.mxu1 %v827_v49  ;;  %829 = vmatprep.subr.bf16.mxu0 %v907_v0 }
  0x6c   :  { %859 = vmatprep.subr.bf16.mxu1 %v830_v52 }
  0x6e   :  { %831 = vmatpush3.bf16.msra.mxu0 %v830_v52 }
  0x6f   :  { %861 = vmatpush3.bf16.msra.mxu1 %v830_v52  ;;  %832 = vmatprep.subr.bf16.mxu0 %v907_v0 }
  0x70   :  { %863 = vmatprep.subr.bf16.mxu1 %v833_v55 }
  0x72   :  { %834 = vmatpush3.bf16.msra.mxu0 %v833_v55 }
  0x73   :  { %865 = vmatpush3.bf16.msra.mxu1 %v833_v55  ;;  %835 = vmatprep.subr.bf16.mxu0 %v907_v0 }
  0x74   :  { %867 = vmatprep.subr.bf16.mxu1 %v836_v58 }
  0x76   :  { %837 = vmatpush3.bf16.msra.mxu0 %v836_v58 }
  0x77   :  { %869 = vmatpush3.bf16.msra.mxu1 %v836_v58 }
 0x121   :  { %v199_v60 = vpop.f32.mrb[0].mxu0 }
 0x122   :  { %v700_v61 = vpop.f32.mrb[1].mxu0  ;;  %v200_v62 = vadd.f32 %v199_v60, %v129_v59 }
 0x124   :  { %v218_v63 = vrot.slane %v200_v62, %v1078_v29 }
 0x129   :  { %v711_v2 = vpop.f32.mrb[2].mxu0 }
 0x12a   :  { %v315_v3 = vadd.f32 %v711_v2, %v218_v63  ;;  %v309_v4 = vpop.f32.mrb[3].mxu0 }
 0x12b   :  { %v310_v6 = vadd.f32 %v309_v4, %v218_v63 }
 0x12c   :  { %v1118_v7 = vmax.f32 %v315_v3, 0.0  ;;  %v413_v3 = vld [vmem:[%s1170_s5] sm:$0x1] }
 0x12d   :  { %v1120_v8 = vmax.f32 %v310_v6, 0.0  ;;  %v714_v0 = vpop.f32.mrb[4].mxu0 }
 0x12e   :  { %v386_v9 = vmul.f32 %v1118_v7, %v1118_v7  ;;  %v325_v10 = vadd.f32 %v714_v0, %v218_v63  ;;  %v319_v11 = vpop.f32.mrb[5].mxu0  ;;  %v415_v0 = vld [vmem:[%s1171_s6] sm:$0x1] }
 0x12f   :  { %v372_v15 = vadd.f32 %v1118_v7, %v1120_v8  ;;  %v385_v19 = vmul.f32 %v1120_v8, %v1120_v8  ;;  %v320_v20 = vadd.f32 %v319_v11, %v218_v63 }
 0x130   :  { %v367_v22 = vmax.f32 %v325_v10, 0.0 }
 0x131   :  { %v393_v21 = vadd.f32 %v386_v9, %v385_v19  ;;  %v366_v24 = vmax.f32 %v320_v20, 0.0  ;;  %v717_v25 = vpop.f32.mrb[6].mxu0 }
 0x132   :  { %v335_v26 = vadd.f32 %v717_v25, %v218_v63  ;;  %v329_v27 = vpop.f32.mrb[7].mxu0  ;;  %v388_v34 = vmul.f32 %v367_v22, %v367_v22 }
 0x133   :  { %v373_v28 = vadd.f32 %v372_v15, %v366_v24  ;;  %v387_v30 = vmul.f32 %v366_v24, %v366_v24  ;;  %v330_v32 = vadd.f32 %v329_v27, %v218_v63 }
 0x134   :  { %v369_v33 = vmax.f32 %v335_v26, 0.0 }
 0x135   :  { %v394_v35 = vadd.f32 %v393_v21, %v387_v30  ;;  %v368_v36 = vmax.f32 %v330_v32, 0.0  ;;  %v374_v37 = vadd.f32 %v373_v28, %v367_v22  ;;  %v720_v38 = vpop.f32.mrb[8].mxu0 }
 0x136   :  { %v345_v39 = vadd.f32 %v720_v38, %v218_v63  ;;  %v339_v12 = vpop.f32.mrb[9].mxu0  ;;  %v390_v16 = vmul.f32 %v369_v33, %v369_v33 }
 0x137   :  { %v375_v5 = vadd.f32 %v374_v37, %v368_v36  ;;  %v389_v41 = vmul.f32 %v368_v36, %v368_v36  ;;  %v395_v13 = vadd.f32 %v394_v35, %v388_v34  ;;  %v340_v14 = vadd.f32 %v339_v12, %v218_v63 }
 0x138   :  { %v371_v18 = vmax.f32 %v345_v39, 0.0 }
 0x139   :  { %v396_v17 = vadd.f32 %v395_v13, %v389_v41  ;;  %v370_v23 = vmax.f32 %v340_v14, 0.0  ;;  %v376_v31 = vadd.f32 %v375_v5, %v369_v33 }
 0x13a   :  { %v392_v44 = vmul.f32 %v371_v18, %v371_v18 }
 0x13b   :  { %v377_v42 = vadd.f32 %v376_v31, %v370_v23  ;;  %v391_v40 = vmul.f32 %v370_v23, %v370_v23  ;;  %v397_v43 = vadd.f32 %v396_v17, %v390_v16 }
 0x13d   :  { %v378_v1 = vadd.f32 %v377_v42, %v371_v18  ;;  %v398_v45 = vadd.f32 %v397_v43, %v391_v40 }
 0x13f   :  { %v379_v46 = vrot.slane %v378_v1, 4  ;;  %v399_v47 = vadd.f32 %v398_v45, %v392_v44 }
 0x141   :  { %v380_v48 = vadd.f32 %v379_v46, %v378_v1  ;;  %v400_v49 = vrot.slane %v399_v47, 4 }
 0x143   :  { %v381_v50 = vrot.slane %v380_v48, 2  ;;  %v401_v51 = vadd.f32 %v400_v49, %v399_v47 }
 0x145   :  { %v382_v52 = vadd.f32 %v381_v50, %v380_v48  ;;  %v402_v53 = vrot.slane %v401_v51, 2 }
 0x147   :  { %v383_v54 = vrot.slane %v382_v52, 1  ;;  %v403_v55 = vadd.f32 %v402_v53, %v401_v51 }
 0x149   :  { %v384_v56 = vadd.f32 %v383_v54, %v382_v52  ;;  %v404_v57 = vrot.slane %v403_v55, 1 }
 0x14b   :  { %v405_v58 = vadd.f32 %v404_v57, %v403_v55  ;;  %v406_v59 = vmul.f32 0.015625, %v384_v56 }
 0x14d   :  { %v407_v60 = vmul.f32 0.015625, %v405_v58  ;;  %v408_v61 = vmul.f32 %v406_v59, %v406_v59 }
 0x14f   :  { %v409_v62 = vsub.f32 %v407_v60, %v408_v61 }
 0x151   :  { %v410_v63 = vmax.f32 %v409_v62, 0.0 }
 0x153   :  { %v411_v2 = vadd.f32 1e-05, %v410_v63 }
 0x155   :  { %878 = vrsqrt.f32 %v411_v2 }
 0x15f   :  { %v879_v4 = vpop.eup %878 }
 0x160   :  { %v414_v6 = vmul.f32 %v879_v4, %v413_v3 }
 0x162   :  { %v416_v9 = vmul.f32 %v414_v6, %v406_v59  ;;  %v492_v10 = vrot.slane %v414_v6, %v1078_v29 }
 0x164   :  { %v417_v11 = vsub.f32 %v415_v0, %v416_v9  ;;  %v493_v15 = vmul.f32 %v492_v10, %v1120_v8  ;;  %v494_v19 = vmul.f32 %v492_v10, %v1118_v7  ;;  %v495_v20 = vmul.f32 %v492_v10, %v366_v24  ;;  %v418_v8 = vld [vmem:[%s1173_s8] sm:$0x1] }
 0x165   :  { %v496_v21 = vmul.f32 %v492_v10, %v367_v22  ;;  %v497_v25 = vmul.f32 %v492_v10, %v368_v36  ;;  %v498_v26 = vmul.f32 %v492_v10, %v369_v33  ;;  %v499_v27 = vmul.f32 %v492_v10, %v370_v23 }
 0x166   :  { %754 = vmatmul.mubr.f32.vlgmr.msra.gmra.mrb[10].mxu0 %v417_v11  ;;  %788 = vmatprep.mubr.f32.mxu1 %v493_v15  ;;  %v500_v28 = vmul.f32 %v492_v10, %v371_v18 }
 0x167   :  { %789 = vmatmul.mubr.f32.vlgmr.msra.gmra.mrb[0].mxu1 %v494_v19 }
 0x168   :  { %791 = vmatprep.mubr.f32.mxu1 %v495_v20 }
 0x16b   :  { %792 = vmatmul.mubr.f32.gmra.mrb[2].mxu1 %v496_v21 }
 0x16c   :  { %794 = vmatprep.mubr.f32.mxu1 %v497_v25 }
 0x16f   :  { %795 = vmatmul.mubr.f32.gmra.mrb[4].mxu1 %v498_v26 }
 0x170   :  { %797 = vmatprep.mubr.f32.mxu1 %v499_v27 }
 0x173   :  { %798 = vmatmul.mubr.f32.gmra.mrb[6].mxu1 %v500_v28 }
 0x239   :  { %v485_v7 = vpop.f32.mrb[10].mxu0 }
 0x23a   :  { %v486_v24 = vadd.f32 %v485_v7, %v418_v8  ;;  %v755_v22 = vpop.f32.mrb[11].mxu0  ;;  %v790_v30 = vpop.f32.mrb[0].mxu1 }
 0x23b   :  { %v571_v32 = vpop.f32.mrb[1].mxu1 }
 0x23c   :  { %v504_v33 = vrot.slane %v486_v24, %v1078_v29 }
 0x23e   :  { %v577_v34 = vadd.f32 %v790_v30, %v504_v33  ;;  %v572_v35 = vadd.f32 %v571_v32, %v504_v33  ;;  %v793_v36 = vpop.f32.mrb[2].mxu1 }
 0x23f   :  { %v587_v37 = vadd.f32 %v793_v36, %v504_v33  ;;  %v581_v38 = vpop.f32.mrb[3].mxu1 }
 0x240   :  { %611 = vst [vmem:[%s1174_s9 + $0x8] sm:$0xff] %v577_v34  ;;  %610 = vst [vmem:[%s1174_s9] sm:$0xff] %v572_v35  ;;  %v582_v39 = vadd.f32 %v581_v38, %v504_v33 }
 0x241   :  { %613 = vst [vmem:[%s1174_s9 + $0x18] sm:$0xff] %v587_v37 }
 0x242   :  { %612 = vst [vmem:[%s1174_s9 + $0x10] sm:$0xff] %v582_v39  ;;  %v796_v29 = vpop.f32.mrb[4].mxu1 }
 0x243   :  { %v597_v12 = vadd.f32 %v796_v29, %v504_v33  ;;  %v591_v5 = vpop.f32.mrb[5].mxu1 }
 0x244   :  { %v592_v41 = vadd.f32 %v591_v5, %v504_v33 }
 0x245   :  { %615 = vst [vmem:[%s1174_s9 + $0x28] sm:$0xff] %v597_v12 }
 0x246   :  { %614 = vst [vmem:[%s1174_s9 + $0x20] sm:$0xff] %v592_v41  ;;  %v799_v13 = vpop.f32.mrb[6].mxu1 }
 0x247   :  { %v607_v14 = vadd.f32 %v799_v13, %v504_v33  ;;  %v601_v16 = vpop.f32.mrb[7].mxu1 }
 0x248   :  { %v602_v17 = vadd.f32 %v601_v16, %v504_v33 }
 0x249   :  { %617 = vst [vmem:[%s1174_s9 + $0x38] sm:$0xff] %v607_v14 }
 0x24a   :  { %616 = vst [vmem:[%s1174_s9 + $0x30] sm:$0xff] %v602_v17 }
 0x24b   :  { %622 = vsyncpa [#allocation3], 1 }

</bundles_post_ra>
